<compile_context>
chip_gen: v7x
topology: tpu7x:2x2x1
jax: 0.10.0
libtpu: 0.0.40
codegen_flags: <defaults>
</compile_context>

<pallas_src>
import functools

import jax
import jax.numpy as jnp
from jax.experimental import pallas as pl
from jax.experimental.pallas import tpu as pltpu

LN_EPS = 1e-12  # BERT default LayerNorm eps


def _fused_dense_ln_kernel(x_ref, w_ref, b_ref, res_ref, gamma_ref, beta_ref,
                           o_ref):
    # x_ref:     (tm, H)  hidden_states tile, native dtype
    # w_ref:     (H, H)   dense weight, (in, out) layout, native dtype
    # b_ref:     (1, H)   dense bias (+ additive offset, folded host-side)
    # res_ref:   (tm, H)  input_tensor (residual) tile
    # gamma_ref: (1, H)   LayerNorm weight
    # beta_ref:  (1, H)   LayerNorm bias (+ additive offset, folded host-side)

    # MXU matmul in native dtype, f32 accumulation.
    acc = jnp.dot(x_ref[...], w_ref[...], preferred_element_type=jnp.float32)

    # dense bias; dropout is identity in eval mode.
    y = acc + b_ref[...].astype(jnp.float32)

    # residual add
    z = y + res_ref[...].astype(jnp.float32)

    # LayerNorm over the hidden axis (f32 epilogue)
    mean = jnp.mean(z, axis=-1, keepdims=True)
    centered = z - mean
    var = jnp.mean(centered * centered, axis=-1, keepdims=True)
    zn = centered * jax.lax.rsqrt(var + LN_EPS)
    out = zn * gamma_ref[...].astype(jnp.float32) + beta_ref[...].astype(jnp.float32)

    o_ref[...] = out.astype(o_ref.dtype)


def _round_up(x, m):
    return (x + m - 1) // m * m


def _min_sublane(dtype):
    itemsize = jnp.dtype(dtype).itemsize
    if itemsize >= 4:
        return 8
    if itemsize == 2:
        return 16
    return 32


def prepare_self_output_params(w_dense, b_dense, gamma, beta,
                               off_dense=None, off_ln=None):
    """One-time, load-time parameter prep (kept OUTSIDE the jitted call):
       - transpose the PyTorch Linear (out, in) weight to (in, out),
       - fold the BitAdditiveBias additive offsets into the biases."""
    w_io = jnp.asarray(w_dense).T
    b_eff = jnp.asarray(b_dense)
    if off_dense is not None:
        b_eff = b_eff + jnp.asarray(off_dense)
    beta_eff = jnp.asarray(beta)
    if off_ln is not None:
        beta_eff = beta_eff + jnp.asarray(off_ln)
    return w_io, b_eff, jnp.asarray(gamma), beta_eff


@functools.partial(jax.jit, static_argnames=("tm",))
def bit_self_output(hidden_states, input_tensor, w_io, b_eff, gamma, beta_eff,
                    *, tm=256):
    """hidden_states, input_tensor: (B, S, H). w_io: (H_in, H_out).
    Returns (B, S, H). tm=256 targets v6e/v7x; use tm=128 on v5e."""
    B, S, H = hidden_states.shape
    M = B * S
    out_dtype = hidden_states.dtype

    # --- pick the effective row tile ------------------------------------
    m_unit = _min_sublane(out_dtype)          # 8 (f32) / 16 (bf16) / 32 (int8)
    m_min = _round_up(M, m_unit)
    if m_min >= 2 * m_unit:
        # keep at least 2 grid steps so both v7x TensorCores get work
        half = _round_up((m_min + 1) // 2, m_unit)
        tm_eff = _round_up(max(m_unit, min(tm, half)), m_unit)
    else:
        tm_eff = m_min
    m_pad = _round_up(M, tm_eff)
    grid = m_pad // tm_eff

    # --- flatten + pad the remainder rows --------------------------------
    x2d = hidden_states.reshape(M, H)
    r2d = input_tensor.reshape(M, H)
    if m_pad != M:
        pad = ((0, m_pad - M), (0, 0))
        x2d = jnp.pad(x2d, pad)
        r2d = jnp.pad(r2d, pad)

    row = lambda v: v.reshape(1, H)

    out2d = pl.pallas_call(
        _fused_dense_ln_kernel,
        out_shape=jax.ShapeDtypeStruct((m_pad, H), out_dtype),
        grid_spec=pltpu.PrefetchScalarGridSpec(
            num_scalar_prefetch=0,
            grid=(grid,),
            in_specs=[
                pl.BlockSpec((tm_eff, H), lambda i: (i, 0)),  # hidden tile
                pl.BlockSpec((H, H), lambda i: (0, 0)),       # weight (grid-invariant)
                pl.BlockSpec((1, H), lambda i: (0, 0)),       # folded dense bias
                pl.BlockSpec((tm_eff, H), lambda i: (i, 0)),  # residual tile
                pl.BlockSpec((1, H), lambda i: (0, 0)),       # LN gamma
                pl.BlockSpec((1, H), lambda i: (0, 0)),       # folded LN bias
            ],
            out_specs=pl.BlockSpec((tm_eff, H), lambda i: (i, 0)),
        ),
        compiler_params=pltpu.CompilerParams(
            dimension_semantics=("parallel",)),
    )(x2d, w_io, row(b_eff), r2d, row(gamma), row(beta_eff))

    if m_pad != M:
        out2d = out2d[:M]
    return out2d.reshape(B, S, H)


def _reference(hidden_states, input_tensor, w_dense, b_dense, gamma, beta,
               off_dense, off_ln):
    x = hidden_states.astype(jnp.float32)
    r = input_tensor.astype(jnp.float32)
    y = x @ w_dense.astype(jnp.float32).T + b_dense + off_dense
    z = y + r
    mean = jnp.mean(z, axis=-1, keepdims=True)
    var = jnp.mean((z - mean) ** 2, axis=-1, keepdims=True)
    zn = (z - mean) / jnp.sqrt(var + LN_EPS)
    return zn * gamma + beta + off_ln


if __name__ == "__main__":
    H = 32
    key = jax.random.PRNGKey(0)
    ks = jax.random.split(key, 8)

    # deterministic synthetic parameters (nn.Linear(H, H) + LayerNorm(H))
    w_dense = jax.random.normal(ks[2], (H, H), jnp.float32) * (1.0 / jnp.sqrt(H))
    b_dense = jax.random.normal(ks[3], (H,), jnp.float32) * 0.1
    gamma = 1.0 + 0.05 * jax.random.normal(ks[4], (H,), jnp.float32)
    beta = 0.05 * jax.random.normal(ks[5], (H,), jnp.float32)
    # additive bias offsets (the "Bit" part); offsets=None would just skip folding
    off_dense = 0.01 * jax.random.normal(ks[6], (H,), jnp.float32)
    off_ln = 0.01 * jax.random.normal(ks[7], (H,), jnp.float32)

    # one-time parameter prep (transpose + offset folding) outside jit
    w_io, b_eff, gamma_p, beta_eff = prepare_self_output_params(
        w_dense, b_dense, gamma, beta, off_dense, off_ln)

    # ---- case 1: f32, M multiple of the sublane unit ---------------------
    B, S = 2, 8
    hidden_states = jax.random.normal(ks[0], (B, S, H), jnp.float32)
    input_tensor = jax.random.normal(ks[1], (B, S, H), jnp.float32)

    out = bit_self_output(hidden_states, input_tensor, w_io, b_eff,
                          gamma_p, beta_eff)
    out = jax.block_until_ready(out)
    ref = _reference(hidden_states, input_tensor, w_dense, b_dense,
                     gamma, beta, off_dense, off_ln)
    assert out.shape == (B, S, H)
    assert jnp.allclose(out, ref, atol=1e-4, rtol=1e-4), \
        f"f32 max err {jnp.max(jnp.abs(out - ref))}"

    # ---- case 2: f32, ragged M (exercises cdiv + padding path) ----------
    B2, S2 = 3, 5   # M = 15, not a multiple of the row tile
    hs2 = jax.random.normal(ks[0], (B2, S2, H), jnp.float32)
    it2 = jax.random.normal(ks[1], (B2, S2, H), jnp.float32)
    out2 = jax.block_until_ready(
        bit_self_output(hs2, it2, w_io, b_eff, gamma_p, beta_eff))
    ref2 = _reference(hs2, it2, w_dense, b_dense, gamma, beta,
                      off_dense, off_ln)
    assert out2.shape == (B2, S2, H)
    assert jnp.allclose(out2, ref2, atol=1e-4, rtol=1e-4), \
        f"ragged max err {jnp.max(jnp.abs(out2 - ref2))}"

    # ---- case 3: bf16 activations/weights, native-dtype MXU inputs ------
    hs_bf = hidden_states.astype(jnp.bfloat16)
    it_bf = input_tensor.astype(jnp.bfloat16)
    w_io_bf, b_eff_bf = w_io.astype(jnp.bfloat16), b_eff.astype(jnp.bfloat16)
    gamma_bf, beta_eff_bf = gamma_p.astype(jnp.bfloat16), beta_eff.astype(jnp.bfloat16)
    out_bf = jax.block_until_ready(
        bit_self_output(hs_bf, it_bf, w_io_bf, b_eff_bf, gamma_bf, beta_eff_bf))
    ref_bf = _reference(hs_bf, it_bf, w_io_bf.T, b_eff_bf, gamma_bf, beta_eff_bf,
                        jnp.zeros((H,), jnp.float32), jnp.zeros((H,), jnp.float32))
    assert out_bf.shape == (B, S, H)
    assert jnp.allclose(out_bf.astype(jnp.float32), ref_bf, atol=5e-2, rtol=5e-2), \
        f"bf16 max err {jnp.max(jnp.abs(out_bf.astype(jnp.float32) - ref_bf))}"

    print("KERNEL_OK")
</pallas_src>

<mosaic_0001>
module attributes {stable_mosaic.version = 11 : i64} {
  func.func @_fused_dense_ln_kernel(%arg0: i32, %arg1: memref<8x32xf32, #tpu.memory_space<vmem>>, %arg2: memref<32x32xf32, #tpu.memory_space<vmem>>, %arg3: memref<1x32xf32, #tpu.memory_space<vmem>>, %arg4: memref<8x32xf32, #tpu.memory_space<vmem>>, %arg5: memref<1x32xf32, #tpu.memory_space<vmem>>, %arg6: memref<1x32xf32, #tpu.memory_space<vmem>>, %arg7: memref<8x32xf32, #tpu.memory_space<vmem>>) attributes {dimension_semantics = [#tpu.dimension_semantics<parallel>], iteration_bounds = array<i64: 2>, scalar_prefetch = 0 : i64, scratch_operands = 0 : i64, tpu.core_type = #tpu.core_type<tc>, window_params = [{transform_indices = @transform_0, window_bounds = array<i64: 8, 32>}, {pipeline_mode = #tpu.pipeline_mode<synchronous>, transform_indices = @transform_1, window_bounds = array<i64: 32, 32>}, {pipeline_mode = #tpu.pipeline_mode<synchronous>, transform_indices = @transform_2, window_bounds = array<i64: 1, 32>}, {transform_indices = @transform_3, window_bounds = array<i64: 8, 32>}, {pipeline_mode = #tpu.pipeline_mode<synchronous>, transform_indices = @transform_4, window_bounds = array<i64: 1, 32>}, {pipeline_mode = #tpu.pipeline_mode<synchronous>, transform_indices = @transform_5, window_bounds = array<i64: 1, 32>}, {transform_indices = @transform_6, window_bounds = array<i64: 8, 32>}]} {
    %c0 = arith.constant 0 : index
    %c0_0 = arith.constant 0 : index
    %0 = vector.load %arg1[%c0, %c0_0] : memref<8x32xf32, #tpu.memory_space<vmem>>, vector<8x32xf32>
    %c0_1 = arith.constant 0 : index
    %c0_2 = arith.constant 0 : index
    %1 = vector.load %arg2[%c0_1, %c0_2] : memref<32x32xf32, #tpu.memory_space<vmem>>, vector<32x32xf32>
    %cst = arith.constant dense<0.000000e+00> : vector<8x32xf32>
    %2 = tpu.matmul %0, %1, %cst {dimension_numbers = #tpu.dot_dimension_numbers<[1], [0], [0], [1], [0, 0, 1, 1], [], []>} : vector<8x32xf32>, vector<32x32xf32>, vector<8x32xf32> -> vector<8x32xf32>
    %c0_3 = arith.constant 0 : index
    %c0_4 = arith.constant 0 : index
    %3 = vector.load %arg3[%c0_3, %c0_4] : memref<1x32xf32, #tpu.memory_space<vmem>>, vector<1x32xf32>
    %4 = vector.broadcast %3 : vector<1x32xf32> to vector<8x32xf32>
    %5 = arith.addf %2, %4 : vector<8x32xf32>
    %c0_5 = arith.constant 0 : index
    %c0_6 = arith.constant 0 : index
    %6 = vector.load %arg4[%c0_5, %c0_6] : memref<8x32xf32, #tpu.memory_space<vmem>>, vector<8x32xf32>
    %7 = arith.addf %5, %6 : vector<8x32xf32>
    %cst_7 = arith.constant dense<0.000000e+00> : vector<8xf32>
    %8 = vector.multi_reduction <add>, %7, %cst_7 [1] : vector<8x32xf32> to vector<8xf32>
    %9 = vector.shape_cast %8 : vector<8xf32> to vector<8x1xf32>
    %cst_8 = arith.constant 3.200000e+01 : f32
    %10 = vector.broadcast %cst_8 : f32 to vector<8x1xf32>
    %11 = arith.divf %9, %10 : vector<8x1xf32>
    %12 = vector.broadcast %11 : vector<8x1xf32> to vector<8x32xf32>
    %13 = arith.subf %7, %12 : vector<8x32xf32>
    %14 = arith.mulf %13, %13 : vector<8x32xf32>
    %cst_9 = arith.constant dense<0.000000e+00> : vector<8xf32>
    %15 = vector.multi_reduction <add>, %14, %cst_9 [1] : vector<8x32xf32> to vector<8xf32>
    %16 = vector.shape_cast %15 : vector<8xf32> to vector<8x1xf32>
    %cst_10 = arith.constant 3.200000e+01 : f32
    %17 = vector.broadcast %cst_10 : f32 to vector<8x1xf32>
    %18 = arith.divf %16, %17 : vector<8x1xf32>
    %cst_11 = arith.constant 9.99999996E-13 : f32
    %19 = vector.broadcast %cst_11 : f32 to vector<8x1xf32>
    %20 = arith.addf %18, %19 : vector<8x1xf32>
    %21 = math.rsqrt %20 : vector<8x1xf32>
    %22 = vector.broadcast %21 : vector<8x1xf32> to vector<8x32xf32>
    %23 = arith.mulf %13, %22 : vector<8x32xf32>
    %c0_12 = arith.constant 0 : index
    %c0_13 = arith.constant 0 : index
    %24 = vector.load %arg5[%c0_12, %c0_13] : memref<1x32xf32, #tpu.memory_space<vmem>>, vector<1x32xf32>
    %25 = vector.broadcast %24 : vector<1x32xf32> to vector<8x32xf32>
    %26 = arith.mulf %23, %25 : vector<8x32xf32>
    %c0_14 = arith.constant 0 : index
    %c0_15 = arith.constant 0 : index
    %27 = vector.load %arg6[%c0_14, %c0_15] : memref<1x32xf32, #tpu.memory_space<vmem>>, vector<1x32xf32>
    %28 = vector.broadcast %27 : vector<1x32xf32> to vector<8x32xf32>
    %29 = arith.addf %26, %28 : vector<8x32xf32>
    %c0_16 = arith.constant 0 : index
    %c0_17 = arith.constant 0 : index
    %30 = vector.load %arg7[%c0_16, %c0_17] : memref<8x32xf32, #tpu.memory_space<vmem>>, vector<8x32xf32>
    tpu.vector_store %arg7[%c0_16, %c0_17], %29 {strides = array<i32>} : memref<8x32xf32, #tpu.memory_space<vmem>>, vector<8x32xf32>,
    return
  }
  func.func @transform_0(%arg0: i32) -> (i32, i32) {
    %c0_i32 = arith.constant 0 : i32
    %c0_i32_0 = arith.constant 0 : i32
    return %arg0, %c0_i32 : i32, i32
  }
  func.func @transform_1(%arg0: i32) -> (i32, i32) {
    %c0_i32 = arith.constant 0 : i32
    %c0_i32_0 = arith.constant 0 : i32
    %c0_i32_1 = arith.constant 0 : i32
    return %c0_i32, %c0_i32_0 : i32, i32
  }
  func.func @transform_2(%arg0: i32) -> (i32, i32) {
    %c0_i32 = arith.constant 0 : i32
    %c0_i32_0 = arith.constant 0 : i32
    %c0_i32_1 = arith.constant 0 : i32
    return %c0_i32, %c0_i32_0 : i32, i32
  }
  func.func @transform_3(%arg0: i32) -> (i32, i32) {
    %c0_i32 = arith.constant 0 : i32
    %c0_i32_0 = arith.constant 0 : i32
    return %arg0, %c0_i32 : i32, i32
  }
  func.func @transform_4(%arg0: i32) -> (i32, i32) {
    %c0_i32 = arith.constant 0 : i32
    %c0_i32_0 = arith.constant 0 : i32
    %c0_i32_1 = arith.constant 0 : i32
    return %c0_i32, %c0_i32_0 : i32, i32
  }
  func.func @transform_5(%arg0: i32) -> (i32, i32) {
    %c0_i32 = arith.constant 0 : i32
    %c0_i32_0 = arith.constant 0 : i32
    %c0_i32_1 = arith.constant 0 : i32
    return %c0_i32, %c0_i32_0 : i32, i32
  }
  func.func @transform_6(%arg0: i32) -> (i32, i32) {
    %c0_i32 = arith.constant 0 : i32
    %c0_i32_0 = arith.constant 0 : i32
    return %arg0, %c0_i32 : i32, i32
  }
}

</mosaic_0001>

<bundles_post_ra>
// kernel: bit_self_output.1
= control target key start
LH: loop header
LB: loop body
LE: loop exit
PB: predicated region body
PF: predicated region fallthrough
CT: control target
= control target key end

     0   :  { %11 = vsyncpa [#allocation3], 0  ;;  %s1022_s0 = inlined_call_operand.vmem [shape: f32[16,32], index: 0, kind: input, shape index: {}]   ;;  %s1023_s1 = inlined_call_operand.hbm [shape: f32[32,32], index: 1, kind: input, shape index: {}]   ;;  %s1024_s2 = inlined_call_operand.vmem [shape: f32[1,32], index: 2, kind: input, shape index: {}]   ;;  %s1025_s3 = inlined_call_operand.hbm [shape: f32[16,32], index: 3, kind: input, shape index: {}]   ;;  %s1026_s4 = inlined_call_operand.vmem [shape: f32[1,32], index: 4, kind: input, shape index: {}]   ;;  %s1027_s5 = inlined_call_operand.vmem [shape: f32[1,32], index: 5, kind: input, shape index: {}]   ;;  %s1028_s6 = inlined_call_operand.hbm [shape: f32[16,32], index: 6, kind: output, shape index: {}]  }
   0x1   :  { %12 = vsyncpa [#allocation6], 0 }
   0x2   :  { %14 = vsyncpa [#allocation6 + $0x1], 0 }
   0x3   :  { %15 = vsyncpa [#allocation4], 0 }
   0x4   :  { %17 = vsyncpa [#allocation4 + $0x1], 0  ;;  %s804_s21 = smov 0   ;;  %s806_s22 = smov 0  }
   0x5   :  { %s808_s23 = smov 0   ;;  %s810_s24 = smov 0  }
   0x6 LB: > { %s825_s25 = sadd.s32 4294967295, %s759_s24   ;;  %s526_s26 = sadd.s32 4294967294, %s759_s24   ;;  %s759_s24 = sphi %s810_s24, %s1048_s24   ;;  %s755_s23 = sphi %s808_s23, %s1047_s23   ;;  %s751_s22 = sphi %s806_s22, %s1046_s22   ;;  %s747_s21 = sphi %s804_s21, %s1045_s21  }
   0x7   : > { %p111_p0 = scmp.ne.s32.totalorder %s751_s22, %s747_s21  ;;  %p1029_p1 = scmp.eq.s32.totalorder %s825_s25, 0 }
   0x8   : > { %p183_p3 = scmp.eq.s32.totalorder %s526_s26, 1  ;;  %p527_p5 = scmp.ge.s32.totalorder %s759_s24, 1 }
   0x9   : > { %p834_p4 = por %p1029_p1, %p111_p0  ;;  %p190_p7 = scmp.lt.s32.totalorder %s759_s24, 3 }
   0xa   : > { %p839_p6 = por %p183_p3, %p111_p0  ;;  %s761_s30 = smov [#allocation2]  }
   0xb   : > { %s1032_s27 = scalar_select %p834_p4, 1, 0 }
   0xc   : > { %s1033_s28 = scalar_select %p839_p6, 1, 0 }
   0xd   : > { %p844_p8 = pnand %p527_p5, %p190_p7  ;;  %s202_s7 = sshll.u32 %s761_s30, 4  ;;  %s848_s7 = int_to_ptr.vmem [resolvable:$true] %s202_s7 }
   0xe   : > { %s860_s9 = sadd.s32 1, %s759_s24   ;;  %s98_s10 = sadd.s32 1, %s755_s23 }
   0xf   : > { %s1034_s29 = scalar_select %p844_p8, 1, 0 }
  0x10   : > { %p575_p9 = pneg %p844_p8  ;;  %s95_s11 = ssub.s32 %s759_s24, %s860_s9 }
  0x11   : > { %s631_s14 = scalar_lea.hbm %s1023_s1, 512 }
  0x12   : > { %p855_p11 = pnand %p575_p9, %p1029_p1  ;;  %p632_p12 = scmp.ne.s32.totalorder %s1023_s1, %s631_s14 }
  0x13   : > { %p638_p5 = scmp.lt.u32.totalorder %s631_s14, %s1023_s1 }
  0x14   : > { %p633_p13 = pneg %p855_p11 }
  0x16   : > { %p634_p0 = pnand %p633_p13, %p632_p12 }
  0x18   : > { %p635_p3 = pneg %p634_p0 }
  0x1a   : > { %p640_p7 = pnand %p638_p5, %p635_p3 }
  0x1c   : > { %643 = shalt.err (!%p640_p7)
}
  0x1d   : > { %s644_s19 = scalar_lea.vmem %s848_s7, 512  ;;  %p652_p2 = scmp.lt.s32.totalorder %s848_s7, %s848_s7 }
  0x1e   : > { %p645_p9 = scmp.ne.s32.totalorder %s848_s7, %s644_s19  ;;  %p653_p6 = scmp.lt.s32.totalorder %s644_s19, %s644_s19 }
  0x20   : > { %p647_p10 = pnand %p645_p9, %p633_p13  ;;  %p654_p4 = por %p653_p6, %p652_p2 }
  0x22   : > { %p648_p1 = pneg %p647_p10 }
  0x24   : > { %p655_p8 = pnand %p654_p4, %p648_p1 }
  0x26   : > { %658 = shalt.err (!%p655_p8)
}
  0x27   : > { %s762_s20 = smov 128   ;;  %s763_s26 = smov 8  }
  0x28   : > { %578 = dma.hbm_to_vmem [thread:$0]  (!%p855_p11), %s1023_s1, 512, %s848_s7, [#allocation3], %s762_s20, %s762_s20, %s763_s26  }
  0x29   : > { %p96_p2 = scmp.eq.s32.totalorder %s95_s11, 0  ;;  %p105_p1 = scmp.ne.s32.totalorder %s755_s23, %s751_s22 }
  0x2a   : > { %p106_p4 = scmp.eq.s32.totalorder %s759_s24, 0  ;;  %p588_p6 = scmp.lt.s32.totalorder %s759_s24, 2 }
  0x2b   : > { %s891_s13 = scalar_select %p96_p2, %s755_s23, %s98_s10  }
  0x2c   : > { %p107_p8 = por %p106_p4, %p105_p1  ;;  %p1036_p10 = scmp.eq.s32.totalorder %s825_s25, 1 }
  0x2d   : > { %s232_s15 = sand.u32 1, %s755_s23   ;;  %s531_s16 = sshll.u32 %s759_s24, 7 }
  0x2e   : > { %p895_p12 = por %p1036_p10, %p105_p1  ;;  %s530_s17 = sshll.u32 %s232_s15, 3 }
  0x2f   : > { %s904_s19 = scalar_lea.hbm %s1025_s3, %s531_s16  ;;  %s236_s7 = scalar_lea.vmem [#allocation5], %s530_s17 }
  0x30   : > { %s243_s10 = sshll.u32 %s236_s7, 4  ;;  %p906_p11 = pnand %p588_p6, %p107_p8  ;;  %s910_s10 = int_to_ptr.vmem [resolvable:$true] %s243_s10 }
  0x31   : > { %s233_s20 = scalar_lea.sflag [#allocation6], %s232_s15  ;;  %s659_s26 = scalar_lea.hbm %s904_s19, 128 }
  0x32   : > { %p660_p13 = scmp.ne.s32.totalorder %s904_s19, %s659_s26  ;;  %p661_p0 = pneg %p906_p11 }
  0x33   : > { %s664_s16 = scalar_lea.hbm %s1025_s3, 256  ;;  %p665_p7 = scmp.lt.u32.totalorder %s904_s19, %s1025_s3 }
  0x34   : > { %p662_p3 = pnand %p661_p0, %p660_p13  ;;  %p666_p9 = scmp.lt.u32.totalorder %s664_s16, %s659_s26 }
  0x35   : > { %p668_p1 = scmp.lt.u32.totalorder %s659_s26, %s904_s19 }
  0x36   : > { %p663_p5 = pneg %p662_p3  ;;  %p667_p2 = por %p666_p9, %p665_p7 }
  0x38   : > { %p669_p4 = por %p668_p1, %p667_p2 }
  0x3a   : > { %p670_p6 = pnand %p669_p4, %p663_p5 }
  0x3c   : > { %673 = shalt.err (!%p670_p6)
}
  0x3d   : > { %s674_s15 = scalar_lea.vmem %s910_s10, 128  ;;  %s764_s18 = smov [#allocation5]  }
  0x3e   : > { %p675_p8 = scmp.ne.s32.totalorder %s910_s10, %s674_s15  ;;  %s679_s7 = sshll.u32 %s764_s18, 4  ;;  %s680_s7 = int_to_ptr.vmem [resolvable:$false] %s679_s7 }
  0x3f   : > { %s681_s30 = scalar_lea.vmem %s680_s7, 256  ;;  %p682_p3 = scmp.lt.s32.totalorder %s910_s10, %s680_s7 }
  0x40   : > { %p677_p10 = pnand %p675_p8, %p661_p0  ;;  %p683_p7 = scmp.lt.s32.totalorder %s681_s30, %s674_s15 }
  0x42   : > { %p678_p13 = pneg %p677_p10  ;;  %p684_p9 = por %p683_p7, %p682_p3 }
  0x44   : > { %p685_p2 = pnand %p684_p9, %p678_p13 }
  0x46   : > { %688 = shalt.err (!%p685_p2)
}
  0x47   : > { %582 = dma.hbm_to_vmem [thread:$0]  (!%p906_p11), %s904_s19, 128, %s910_s10, %s233_s20  }
  0x48   : > { %p1039_p5 = scmp.ne.s32.totalorder %s1034_s29, 0 }
  0x49   : > { %p1040_p0 = scmp.eq.s32.totalorder (!%p1039_p5), %s825_s25, 0 }
  0x4a   : > { %252 = sbr.rel (%p1039_p5) target bundleno = 640 (0x280), region = 44 }
  0x51   : > { %734 = dma.done.wait (%p1040_p0), [#allocation3], 512   ;;  %p1041_p1 = pmov %p1040_p0 }
  0x52   : > { %s944_s26 = sand.u32 1, %s751_s22   ;;  %p1042_p11 = scmp.ne.s32.totalorder %s1032_s27, 0 }
  0x53   : > { %736 = vsyncadd (%p1041_p1), [#allocation3], 4294966784  ;;  %s534_s11 = sshll.u32 %s944_s26, 3  ;;  %s259_s12 = scalar_lea.sflag [#allocation6], %s944_s26 }
  0x54   : > { %s262_s19 = scalar_lea.vmem [#allocation5], %s534_s11 }
  0x55   : > { %738 = dma.done.wait (%p1042_p11), %s259_s12, 128  }
  0x56   : > { %740 = vsyncadd (%p1042_p11), %s259_s12, 4294967168  ;;  %p295_p4 = scmp.lt.s32.totalorder %s825_s25, 1  ;;  %v765_v0 = vmov 0.0|0.0   ;;  %vm766_vm0 = vmmov 0   ;;  %v767_v1 = vmov 0.0   ;;  %v300_v2 = vld [vmem:[#allocation2] sm:$0xff] }
  0x57   : > { %561 = vmatprep.subr.bf16.mxu0 %v765_v0  ;;  %558 = vmatprep.mubr.msk.f32.mxu0 %vm766_vm0, %v767_v1  ;;  %v301_v3 = vld [vmem:[#allocation2 + $0x8] sm:$0xff]  ;;  %v302_v4 = vld [vmem:[#allocation2 + $0x10] sm:$0xff]  ;;  %v303_v6 = vld [vmem:[#allocation2 + $0x18] sm:$0xff]  ;;  %vm311_vm1 = vcmask 261120   ;;  %s542_s12 = sshll.u32 %s825_s25, 7 }
  0x58   : > { %s296_s29 = scalar_select %p295_p4, %s825_s25, 1  ;;  %v562_v5 = vpack.c.bf16 %v301_v3, %v300_v2  ;;  %v565_v7 = vpack.c.bf16 %v303_v6, %v302_v4  ;;  %v537_v9 = vld [vmem:[%s1024_s2] ss:$0 sm:$0xff] }
  0x59   : > { %v385_v11 = vld [vmem:[%s262_s19] sm:$0xff]  ;;  %s294_s19 = scalar_lea.vmem [#allocation7], %s534_s11  ;;  %s977_s20 = scalar_lea.hbm %s1028_s6, %s542_s12 }
  0x5a   : > { %s536_s10 = sshll.u32 %s296_s29, 3  ;;  %563 = vmatpush3.bf16.msra.mxu0 %v562_v5  ;;  %v539_v25 = vld [vmem:[%s1026_s4] ss:$0 sm:$0xff]  ;;  %s432_s29 = sshll.u32 %s294_s19, 4  ;;  %s979_s29 = int_to_ptr.vmem [resolvable:$true] %s432_s29 }
  0x5b   : > { %564 = vmatprep.subr.bf16.mxu0 %v765_v0  ;;  %s298_s16 = scalar_lea.vmem %s1022_s0, %s536_s10  ;;  %v540_v27 = vld [vmem:[%s1027_s5] ss:$0 sm:$0xff]  ;;  %s689_s17 = scalar_lea.vmem %s979_s29, 128 }
  0x5c   : > { %v299_v8 = vld [vmem:[%s298_s16] sm:$0xff]  ;;  %s419_s16 = scalar_lea.sflag [#allocation4], %s944_s26  ;;  %p690_p6 = scmp.ne.s32.totalorder %s979_s29, %s689_s17 }
  0x5d   : > { %s768_s25 = smov [#allocation7]  }
  0x5e   : > { %566 = vmatpush3.bf16.msra.mxu0 %v565_v7  ;;  %p691_p8 = pnand %p690_p6, %p895_p12  ;;  %s693_s11 = sshll.u32 %s768_s25, 4  ;;  %s694_s11 = int_to_ptr.vmem [resolvable:$false] %s693_s11 }
  0x5f   : > { %s695_s8 = scalar_lea.vmem %s694_s11, 256  ;;  %p696_p13 = scmp.lt.s32.totalorder %s979_s29, %s694_s11 }
  0x60   : > { %p692_p10 = pneg %p691_p8  ;;  %p697_p3 = scmp.lt.s32.totalorder %s695_s8, %s689_s17 }
  0x61   : > { %559 = vmatmul.mubr.msk.f32.vlgmr.msra.gmra.mrb[0].mxu0 %vm311_vm1, %v299_v8 }
  0x62   : > { %p698_p7 = por %p697_p3, %p696_p13 }
  0x64   : > { %p699_p9 = pnand %p698_p7, %p692_p10 }
 0x134   : > { %v381_v10 = vpop.f32.mrb[0].mxu0 }
 0x135   : > { %v382_v12 = vadd.f32 %v537_v9, %v381_v10  ;;  %v560_v13 = vpop.f32.mrb[1].mxu0 }
 0x137   : > { %v386_v14 = vadd.f32 %v385_v11, %v382_v12 }
 0x139   : > { %v387_v15 = vsel %vm311_vm1, %v386_v14, 0.0 }
 0x13a   : > { %388 = vadd.xlane.f32.xlu0 %v387_v15 }
 0x1c7   : > { %v389_v16 = vpop.xlane.xlu0 %388 }
 0x1c8   : > { %v391_v17 = vmul.f32 0.03125, %v389_v16 }
 0x1ca   : > { %v392_v18 = vsub.f32 %v386_v14, %v391_v17 }
 0x1cc   : > { %v393_v19 = vmul.f32 %v392_v18, %v392_v18 }
 0x1ce   : > { %v394_v20 = vsel %vm311_vm1, %v393_v19, 0.0 }
 0x1cf   : > { %395 = vadd.xlane.f32.xlu0 %v394_v20 }
 0x25c   : > { %v396_v21 = vpop.xlane.xlu0 %395 }
 0x25d   : > { %v397_v22 = vmul.f32 0.03125, %v396_v21 }
 0x25f   : > { %v398_v23 = vadd.f32 1e-12, %v397_v22 }
 0x261   : > { %629 = vrsqrt.f32 %v398_v23 }
 0x26b   : > { %v630_v24 = vpop.eup %629 }
 0x26c   : > { %v400_v26 = vmul.f32 %v630_v24, %v392_v18 }
 0x26e   : > { %v408_v28 = vmul.f32 %v539_v25, %v400_v26 }
 0x270   : > { %v416_v29 = vadd.f32 %v540_v27, %v408_v28 }
 0x272   : > { %417 = vst.msk [vmem:[%s294_s19] sm:$0xff] %vm311_vm1, %v416_v29 }
 0x273   : > { %702 = shalt.err (!%p699_p9)
}
 0x274   : > { %s703_s26 = scalar_lea.hbm %s977_s20, 128  ;;  %s707_s7 = scalar_lea.hbm %s1028_s6, 256 }
 0x275   : > { %p704_p2 = scmp.ne.s32.totalorder %s977_s20, %s703_s26  ;;  %p708_p1 = scmp.lt.u32.totalorder %s977_s20, %s1028_s6 }
 0x276   : > { %p709_p11 = scmp.lt.u32.totalorder %s707_s7, %s703_s26  ;;  %p711_p6 = scmp.lt.u32.totalorder %s703_s26, %s977_s20 }
 0x277   : > { %p705_p5 = pnand %p704_p2, %p895_p12 }
 0x278   : > { %p710_p4 = por %p709_p11, %p708_p1 }
 0x279   : > { %p706_p0 = pneg %p705_p5 }
 0x27a   : > { %p712_p8 = por %p711_p6, %p710_p4 }
 0x27c   : > { %p713_p10 = pnand %p712_p8, %p706_p0 }
 0x27e   : > { %716 = shalt.err (!%p713_p10)
}
 0x27f   : > { %573 = dma.vmem_to_hbm [thread:$0]  (%p895_p12), %s979_s29, 128, %s977_s20, %s419_s16  }
 0x280 PF: > { %s444_s19 = sand.u32 1, %s747_s21   ;;  %p1043_p13 = scmp.ne.s32.totalorder %s1033_s28, 0 }
 0x281   : > { %p1044_p3 = scmp.ge.s32.totalorder %s759_s24, 2  ;;  %s445_s10 = scalar_lea.sflag [#allocation4], %s444_s19 }
 0x283   : > { %p584_p7 = pnand %p1044_p3, %p1043_p13 }
 0x285   : > { %742 = dma.done.wait (!%p584_p7), %s445_s10, 128  }
 0x286   : > { %744 = vsyncadd (!%p584_p7), %s445_s10, 4294967168  ;;  %p20_p9 = scmp.ge.s32.totalorder %s860_s9, 4   ;;  %s1045_s21 = smov %s751_s22 }
 0x287   : > { %s1046_s22 = smov %s755_s23  ;;  %s1047_s23 = smov %s891_s13 }
 0x288   : > { %s1048_s24 = smov %s860_s9  ;;  %22 = sbr.rel (!%p20_p9) target bundleno = 6 (0x6), region = 97 }
 0x28f   :  { %450 = vsyncpa [#allocation3], 1 }
 0x290   :  { %452 = vsyncpa [#allocation3 + $0x1], 1 }
 0x291   :  { %453 = vsyncpa [#allocation6], 1 }
 0x292   :  { %455 = vsyncpa [#allocation6 + $0x1], 1 }
 0x293   :  { %456 = vsyncpa [#allocation4], 1 }
 0x294   :  { %458 = vsyncpa [#allocation4 + $0x1], 1 }

</bundles_post_ra>
